<compile_context>
chip_gen: v5e
topology: v5e:2x2
jax: 0.10.0
libtpu: 0.0.40
codegen_flags: <defaults>
</compile_context>

<pallas_src>
import functools

import jax
import jax.numpy as jnp
from jax.experimental import pallas as pl
from jax.experimental.pallas import tpu as pltpu


_VMEM_LIMIT = 48 * 1024 * 1024      # <= physical VMEM on v5e/v6e/v7x
_GN_TILE_BYTES = 4 * 1024 * 1024    # target bytes for a GroupNorm (THW, C) tile
_CONV_TILE_BYTES = 2 * 1024 * 1024  # target bytes for a conv3x3 row tile
_MM_TILE_BYTES = 4 * 1024 * 1024    # target bytes for a 1x1-conv row tile
_ATTN_Q_TILE = 256                  # max query-tile rows
_ATTN_KV_TILE = 512                 # max key/value-tile rows


def _cparams(*semantics):
    return pltpu.CompilerParams(dimension_semantics=tuple(semantics),
                                vmem_limit_bytes=_VMEM_LIMIT)


def _pick_tile(total, unit_bytes, target_bytes, multiple=1):
    """Largest divisor of `total` (multiple of `multiple`, or == total) whose
    size in bytes fits `target_bytes`; falls back to the smallest valid one."""
    divisors = [d for d in range(1, total + 1) if total % d == 0]
    valid = [d for d in divisors if d % multiple == 0]
    if not valid:
        valid = [total]
    fitting = [d for d in valid if d * unit_bytes <= target_bytes]
    return max(fitting) if fitting else min(valid)


def _nearest2x(x):
    """Nearest-neighbor 2x upsample (NHWC) as a single broadcast+reshape; XLA
    fuses this into the conv input preparation that consumes it."""
    B, H, W, C = x.shape
    y = jnp.broadcast_to(x[:, :, None, :, None, :], (B, H, 2, W, 2, C))
    return y.reshape(B, 2 * H, 2 * W, C)


# ----------------------------------------------------------------------------
# Pallas kernels
# ----------------------------------------------------------------------------
def _gn_stats_kernel(x_ref, gmap_ref, sum_ref, ssq_ref, sacc_ref, qacc_ref):
    """Pass 1 of GroupNorm: accumulate per-group sum / sum-of-squares.

    x_ref: (1, THW, C); gmap_ref: (C, 128) one-hot channel->group map.
    Outputs (revisited across the HW-tile axis): sum/ssq (1, 1, 128).
    """
    t = pl.program_id(1)

    @pl.when(t == 0)
    def _():
        sacc_ref[...] = jnp.zeros(sacc_ref.shape, jnp.float32)
        qacc_ref[...] = jnp.zeros(qacc_ref.shape, jnp.float32)

    x = x_ref[0].astype(jnp.float32)                         # (THW, C)
    gmap = gmap_ref[...]                                     # (C, 128)
    sum_c = jnp.sum(x, axis=0, keepdims=True)                # (1, C)
    ssq_c = jnp.sum(x * x, axis=0, keepdims=True)            # (1, C)
    sacc_ref[...] += jnp.dot(sum_c, gmap, preferred_element_type=jnp.float32)
    qacc_ref[...] += jnp.dot(ssq_c, gmap, preferred_element_type=jnp.float32)

    @pl.when(t == pl.num_programs(1) - 1)
    def _():
        sum_ref[0] = sacc_ref[...]
        ssq_ref[0] = qacc_ref[...]


def _gn_apply_kernel(x_ref, sum_ref, ssq_ref, gmapT_ref, gamma_ref, beta_ref,
                     o_ref, *, silu, inv_count, eps):
    """Pass 2 of GroupNorm: normalize one (1, THW, C) tile (+ optional SiLU)."""
    x = x_ref[0].astype(jnp.float32)                         # (THW, C)
    mean_g = sum_ref[0] * inv_count                          # (1, 128)
    var_g = jnp.maximum(ssq_ref[0] * inv_count - mean_g * mean_g, 0.0)
    gmapT = gmapT_ref[...]                                   # (128, C)
    mean_c = jnp.dot(mean_g, gmapT, preferred_element_type=jnp.float32)  # (1, C)
    var_c = jnp.dot(var_g, gmapT, preferred_element_type=jnp.float32)    # (1, C)
    inv_c = jax.lax.rsqrt(var_c + eps)
    y = (x - mean_c) * (inv_c * gamma_ref[...].astype(jnp.float32))
    y = y + beta_ref[...].astype(jnp.float32)
    if silu:
        y = y * jax.nn.sigmoid(y)
    o_ref[0] = y.astype(o_ref.dtype)


def _conv3x3_kernel(x_ref, w_ref, b_ref, *refs, merged, with_residual):
    """3x3 / stride 1 / pad 1 conv on one (batch, row-tile) block.

    x_ref: (1, 1, TH+2, W+2, Cin) halo slab.
    merged=True  -> w_ref: (3, 3*Cin, Cout), 3 matmuls with K=3*Cin.
    merged=False -> w_ref: (3, 3, Cin, Cout), 9 matmuls with K=Cin.
    Optional residual (1, TH, W, Cout) is fused into the epilogue.
    """
    if with_residual:
        res_ref, o_ref = refs
    else:
        (o_ref,) = refs
    TH = o_ref.shape[1]
    W = o_ref.shape[2]
    Cout = o_ref.shape[3]

    acc = jnp.zeros((TH, W, Cout), jnp.float32)
    if merged:
        for ky in range(3):
            xs = jnp.concatenate(
                [x_ref[0, 0, ky:ky + TH, kx:kx + W, :] for kx in range(3)],
                axis=-1)                                     # (TH, W, 3*Cin)
            acc = acc + jax.lax.dot_general(
                xs, w_ref[ky], (((2,), (0,)), ((), ())),
                preferred_element_type=jnp.float32)
    else:
        for ky in range(3):
            for kx in range(3):
                xs = x_ref[0, 0, ky:ky + TH, kx:kx + W, :]   # (TH, W, Cin)
                acc = acc + jax.lax.dot_general(
                    xs, w_ref[ky, kx], (((2,), (0,)), ((), ())),
                    preferred_element_type=jnp.float32)

    y = acc + b_ref[...].astype(jnp.float32)
    if with_residual:
        y = y + res_ref[0].astype(jnp.float32)
    o_ref[0] = y.astype(o_ref.dtype)


def _matmul_bias_kernel(x_ref, w_ref, b_ref, *refs, with_residual):
    """1x1 conv == matmul + bias (+ optional fused residual)."""
    if with_residual:
        res_ref, o_ref = refs
    else:
        (o_ref,) = refs
    y = jnp.dot(x_ref[...], w_ref[...], preferred_element_type=jnp.float32)
    y = y + b_ref[...].astype(jnp.float32)
    if with_residual:
        y = y + res_ref[...].astype(jnp.float32)
    o_ref[...] = y.astype(o_ref.dtype)


def _attn_kernel(q_ref, k_ref, v_ref, o_ref, m_ref, l_ref, acc_ref, *, scale):
    """Flash-style single-head attention: online softmax over KV tiles."""
    ki = pl.program_id(2)

    @pl.when(ki == 0)
    def _():
        m_ref[...] = jnp.full(m_ref.shape, -1e30, jnp.float32)
        l_ref[...] = jnp.zeros(l_ref.shape, jnp.float32)
        acc_ref[...] = jnp.zeros(acc_ref.shape, jnp.float32)

    q = q_ref[0].astype(jnp.float32)                         # (tq, C)
    k = k_ref[0].astype(jnp.float32)                         # (tk, C)
    v = v_ref[0].astype(jnp.float32)                         # (tk, C)

    s = jax.lax.dot_general(q, k, (((1,), (1,)), ((), ())),
                            preferred_element_type=jnp.float32) * scale  # (tq, tk)
    m_prev = m_ref[...]
    m_new = jnp.maximum(m_prev, jnp.max(s, axis=-1, keepdims=True))
    alpha = jnp.exp(m_prev - m_new)
    p = jnp.exp(s - m_new)
    l_ref[...] = alpha * l_ref[...] + jnp.sum(p, axis=-1, keepdims=True)
    acc_ref[...] = alpha * acc_ref[...] + jnp.dot(
        p, v, preferred_element_type=jnp.float32)
    m_ref[...] = m_new

    @pl.when(ki == pl.num_programs(2) - 1)
    def _():
        inv_l = pl.reciprocal(l_ref[...], approx=True)
        o_ref[0] = (acc_ref[...] * inv_l).astype(o_ref.dtype)


# ----------------------------------------------------------------------------
# Pallas wrappers
# ----------------------------------------------------------------------------
def pallas_group_norm(x, gamma, beta, *, num_groups=32, eps=1e-6, silu=False,
                      tile_hw=None):
    B, H, W, C = x.shape
    HW = H * W
    G = num_groups
    assert C % G == 0
    cg = C // G
    itemsize = x.dtype.itemsize
    if tile_hw is None:
        tile_hw = _pick_tile(HW, C * itemsize, _GN_TILE_BYTES, multiple=8)
    T = HW // tile_hw

    xf = x.reshape(B, HW, C)
    GP = 128  # group axis padded to the lane width
    grp = jnp.arange(C) // cg
    gmap = (grp[:, None] == jnp.arange(GP)[None, :]).astype(jnp.float32)   # (C, 128)
    gmapT = gmap.T                                                          # (128, C)
    inv_count = 1.0 / float(HW * cg)

    stats_spec = pl.BlockSpec((1, 1, GP), lambda nb, t: (nb, 0, 0))
    sum_s, ssq_s = pl.pallas_call(
        _gn_stats_kernel,
        out_shape=(jax.ShapeDtypeStruct((B, 1, GP), jnp.float32),
                   jax.ShapeDtypeStruct((B, 1, GP), jnp.float32)),
        grid=(B, T),
        in_specs=[pl.BlockSpec((1, tile_hw, C), lambda nb, t: (nb, t, 0)),
                  pl.BlockSpec((C, GP), lambda nb, t: (0, 0))],
        out_specs=(stats_spec, stats_spec),
        scratch_shapes=[pltpu.VMEM((1, GP), jnp.float32),
                        pltpu.VMEM((1, GP), jnp.float32)],
        compiler_params=_cparams("parallel", "arbitrary"),
    )(xf, gmap)

    kern = functools.partial(_gn_apply_kernel, silu=silu, inv_count=inv_count,
                             eps=eps)
    out = pl.pallas_call(
        kern,
        out_shape=jax.ShapeDtypeStruct((B, HW, C), x.dtype),
        grid=(B, T),
        in_specs=[pl.BlockSpec((1, tile_hw, C), lambda nb, t: (nb, t, 0)),
                  pl.BlockSpec((1, 1, GP), lambda nb, t: (nb, 0, 0)),
                  pl.BlockSpec((1, 1, GP), lambda nb, t: (nb, 0, 0)),
                  pl.BlockSpec((GP, C), lambda nb, t: (0, 0)),
                  pl.BlockSpec((1, C), lambda nb, t: (0, 0)),
                  pl.BlockSpec((1, C), lambda nb, t: (0, 0))],
        out_specs=pl.BlockSpec((1, tile_hw, C), lambda nb, t: (nb, t, 0)),
        compiler_params=_cparams("parallel", "parallel"),
    )(xf, sum_s, ssq_s, gmapT, gamma.reshape(1, C), beta.reshape(1, C))
    return out.reshape(B, H, W, C)


def pallas_conv3x3(x, w, b, residual=None, *, upsample2x=False, row_tile=None):
    """3x3 conv (stride 1, pad 1), optionally fused with a preceding nearest-2x
    upsample and/or a trailing residual add."""
    if upsample2x:
        x = _nearest2x(x)
    B, H, W, Cin = x.shape
    Cout = w.shape[-1]
    itemsize = x.dtype.itemsize
    if row_tile is None:
        unit = (W + 2) * Cin * itemsize + W * Cout * 4
        row_tile = _pick_tile(H, unit, _CONV_TILE_BYTES)
    T = H // row_tile

    # Halo-duplicated row slabs: (B, T, TH+2, W+2, Cin).
    xp = jnp.pad(x, ((0, 0), (1, 1), (1, 1), (0, 0)))
    if T == 1:
        xt = xp[:, None]
    else:
        xt = jnp.stack(
            [xp[:, i * row_tile:i * row_tile + row_tile + 2] for i in range(T)],
            axis=1)

    merged = (Cin % 128 == 0)
    if merged:
        w_in = w.reshape(3, 3 * Cin, Cout)
        w_spec = pl.BlockSpec((3, 3 * Cin, Cout), lambda nb, t: (0, 0, 0))
    else:
        w_in = w
        w_spec = pl.BlockSpec((3, 3, Cin, Cout), lambda nb, t: (0, 0, 0, 0))

    in_specs = [
        pl.BlockSpec((1, 1, row_tile + 2, W + 2, Cin),
                     lambda nb, t: (nb, t, 0, 0, 0)),
        w_spec,
        pl.BlockSpec((1, Cout), lambda nb, t: (0, 0)),
    ]
    inputs = [xt, w_in, b.reshape(1, Cout)]
    with_residual = residual is not None
    if with_residual:
        in_specs.append(pl.BlockSpec((1, row_tile, W, Cout),
                                     lambda nb, t: (nb, t, 0, 0)))
        inputs.append(residual)

    kern = functools.partial(_conv3x3_kernel, merged=merged,
                             with_residual=with_residual)
    out = pl.pallas_call(
        kern,
        out_shape=jax.ShapeDtypeStruct((B, H, W, Cout), x.dtype),
        grid=(B, T),
        in_specs=in_specs,
        out_specs=pl.BlockSpec((1, row_tile, W, Cout),
                               lambda nb, t: (nb, t, 0, 0)),
        compiler_params=_cparams("parallel", "parallel"),
    )(*inputs)
    return out


def pallas_conv1x1(x, w, b, residual=None, *, n_tile=None):
    B, H, W, Cin = x.shape
    Cout = w.shape[-1]
    N = B * H * W
    itemsize = x.dtype.itemsize
    if n_tile is None:
        unit = (Cin + 2 * Cout) * itemsize
        n_tile = _pick_tile(N, unit, _MM_TILE_BYTES, multiple=8)
    T = N // n_tile
    xf = x.reshape(N, Cin)

    in_specs = [pl.BlockSpec((n_tile, Cin), lambda i: (i, 0)),
                pl.BlockSpec((Cin, Cout), lambda i: (0, 0)),
                pl.BlockSpec((1, Cout), lambda i: (0, 0))]
    inputs = [xf, w, b.reshape(1, Cout)]
    with_residual = residual is not None
    if with_residual:
        in_specs.append(pl.BlockSpec((n_tile, Cout), lambda i: (i, 0)))
        inputs.append(residual.reshape(N, Cout))

    kern = functools.partial(_matmul_bias_kernel, with_residual=with_residual)
    out = pl.pallas_call(
        kern,
        out_shape=jax.ShapeDtypeStruct((N, Cout), x.dtype),
        grid=(T,),
        in_specs=in_specs,
        out_specs=pl.BlockSpec((n_tile, Cout), lambda i: (i, 0)),
        compiler_params=_cparams("parallel"),
    )(*inputs)
    return out.reshape(B, H, W, Cout)


def pallas_attention(q, k, v, *, q_tile=None, kv_tile=None):
    B, H, W, C = q.shape
    HW = H * W
    scale = float(int(C)) ** (-0.5)
    if q_tile is None:
        q_tile = _pick_tile(HW, 1, _ATTN_Q_TILE, multiple=8)
    if kv_tile is None:
        kv_tile = _pick_tile(HW, 1, _ATTN_KV_TILE, multiple=8)
    nq = HW // q_tile
    nk = HW // kv_tile

    qf = q.reshape(B, HW, C)
    kf = k.reshape(B, HW, C)
    vf = v.reshape(B, HW, C)
    kern = functools.partial(_attn_kernel, scale=scale)
    out = pl.pallas_call(
        kern,
        out_shape=jax.ShapeDtypeStruct((B, HW, C), q.dtype),
        grid=(B, nq, nk),
        in_specs=[pl.BlockSpec((1, q_tile, C), lambda nb, qi, ki: (nb, qi, 0)),
                  pl.BlockSpec((1, kv_tile, C), lambda nb, qi, ki: (nb, ki, 0)),
                  pl.BlockSpec((1, kv_tile, C), lambda nb, qi, ki: (nb, ki, 0))],
        out_specs=pl.BlockSpec((1, q_tile, C), lambda nb, qi, ki: (nb, qi, 0)),
        scratch_shapes=[pltpu.VMEM((q_tile, 1), jnp.float32),
                        pltpu.VMEM((q_tile, 1), jnp.float32),
                        pltpu.VMEM((q_tile, C), jnp.float32)],
        compiler_params=_cparams("parallel", "parallel", "arbitrary"),
    )(qf, kf, vf)
    return out.reshape(B, H, W, C)


# ----------------------------------------------------------------------------
# Module-level forward functions (mirroring the PyTorch modules)
# ----------------------------------------------------------------------------
def resnet_block(x, p):
    h = pallas_group_norm(x, p['norm1_g'], p['norm1_b'], silu=True)
    h = pallas_conv3x3(h, p['conv1_w'], p['conv1_b'])
    # temb is None and temb_channels == 0 in the Decoder -> no temb_proj.
    h = pallas_group_norm(h, p['norm2_g'], p['norm2_b'], silu=True)
    # dropout(p=0.0) is the identity.
    if 'nin_w' in p:
        h = pallas_conv3x3(h, p['conv2_w'], p['conv2_b'])
        # residual add fused into the 1x1 shortcut conv.
        return pallas_conv1x1(x, p['nin_w'], p['nin_b'], residual=h)
    # residual add fused into the second 3x3 conv.
    return pallas_conv3x3(h, p['conv2_w'], p['conv2_b'], residual=x)


def attn_block(x, p):
    h = pallas_group_norm(x, p['norm_g'], p['norm_b'], silu=False)
    q = pallas_conv1x1(h, p['q_w'], p['q_b'])
    k = pallas_conv1x1(h, p['k_w'], p['k_b'])
    v = pallas_conv1x1(h, p['v_w'], p['v_b'])
    a = pallas_attention(q, k, v)
    # residual add fused into the projection conv.
    return pallas_conv1x1(a, p['proj_w'], p['proj_b'], residual=x)


def decoder_forward(z_nchw, params):
    # layout: NCHW in / out (PyTorch convention); NHWC internally.
    h = jnp.transpose(z_nchw, (0, 2, 3, 1))
    h = pallas_conv3x3(h, params['conv_in_w'], params['conv_in_b'])
    h = resnet_block(h, params['mid_block1'])
    h = attn_block(h, params['mid_attn'])
    h = resnet_block(h, params['mid_block2'])
    for up in params['up_blocks']:
        for i, blk in enumerate(up['blocks']):
            h = resnet_block(h, blk)
            if i < len(up['attn']):
                h = attn_block(h, up['attn'][i])
        if up['upsample'] is not None:
            # nearest-2x upsample fused into the upsample conv.
            h = pallas_conv3x3(h, up['upsample']['w'], up['upsample']['b'],
                               upsample2x=True)
    h = pallas_group_norm(h, params['norm_out_g'], params['norm_out_b'],
                          silu=True)
    h = pallas_conv3x3(h, params['conv_out_w'], params['conv_out_b'])
    return jnp.transpose(h, (0, 3, 1, 2))


# ----------------------------------------------------------------------------
# Deterministic parameter initialization (shapes mirror Decoder.__init__)
# ----------------------------------------------------------------------------
def _init_conv(key, kh, kw, cin, cout):
    k1, k2 = jax.random.split(key)
    w = jax.random.normal(k1, (kh, kw, cin, cout), jnp.float32) * 0.05
    b = jax.random.normal(k2, (cout,), jnp.float32) * 0.01
    return w, b


def _init_gn(key, c):
    k1, k2 = jax.random.split(key)
    gamma = 1.0 + jax.random.normal(k1, (c,), jnp.float32) * 0.02
    beta = jax.random.normal(k2, (c,), jnp.float32) * 0.02
    return gamma, beta


def _init_resnet(key, cin, cout):
    ks = jax.random.split(key, 5)
    p = {}
    p['norm1_g'], p['norm1_b'] = _init_gn(ks[0], cin)
    p['conv1_w'], p['conv1_b'] = _init_conv(ks[1], 3, 3, cin, cout)
    p['norm2_g'], p['norm2_b'] = _init_gn(ks[2], cout)
    p['conv2_w'], p['conv2_b'] = _init_conv(ks[3], 3, 3, cout, cout)
    if cin != cout:
        w, b = _init_conv(ks[4], 1, 1, cin, cout)
        p['nin_w'], p['nin_b'] = w.reshape(cin, cout), b
    return p


def _init_attn(key, c):
    ks = jax.random.split(key, 5)
    p = {}
    p['norm_g'], p['norm_b'] = _init_gn(ks[0], c)
    for name, k in zip(['q', 'k', 'v', 'proj'], ks[1:]):
        w, b = _init_conv(k, 1, 1, c, c)
        p[f'{name}_w'], p[f'{name}_b'] = w.reshape(c, c), b
    return p


def init_decoder(key, *, out_ch, ch, z_channels, resolution, num_res_blocks,
                 ch_mult, attn_resolutions, resamp_with_conv=True):
    num_resolutions = len(ch_mult)
    curr_res = resolution // 2 ** (num_resolutions - 1)
    mid_ch = ch * ch_mult[-1]
    keys = iter(jax.random.split(key, 128))
    params = {}
    params['conv_in_w'], params['conv_in_b'] = _init_conv(next(keys), 3, 3,
                                                          z_channels, mid_ch)
    params['mid_block1'] = _init_resnet(next(keys), mid_ch, mid_ch)
    params['mid_attn'] = _init_attn(next(keys), mid_ch)
    params['mid_block2'] = _init_resnet(next(keys), mid_ch, mid_ch)
    params['up_blocks'] = []
    for i in reversed(range(num_resolutions)):
        out_c = ch * ch_mult[i]
        blocks, attn = [], []
        channels = mid_ch
        for _ in range(num_res_blocks + 1):
            blocks.append(_init_resnet(next(keys), channels, out_c))
            channels = out_c
            if curr_res in attn_resolutions:
                attn.append(_init_attn(next(keys), channels))
        up = {'blocks': blocks, 'attn': attn, 'upsample': None}
        if resamp_with_conv:
            w, b = _init_conv(next(keys), 3, 3, channels, channels)
            up['upsample'] = {'w': w, 'b': b}
        params['up_blocks'].append(up)
        mid_ch = out_c
        if i > 0:
            curr_res *= 2
    params['norm_out_g'], params['norm_out_b'] = _init_gn(next(keys), mid_ch)
    params['conv_out_w'], params['conv_out_b'] = _init_conv(next(keys), 3, 3,
                                                            mid_ch, out_ch)
    return params


# ----------------------------------------------------------------------------
# Pure-JAX references for self-checks
# ----------------------------------------------------------------------------
_HI = jax.lax.Precision.HIGHEST


def _gn_reference(x, gamma, beta, G=32, eps=1e-6, silu=False):
    B, H, W, C = x.shape
    xg = x.reshape(B, H * W, G, C // G).astype(jnp.float32)
    mean = jnp.mean(xg, axis=(1, 3), keepdims=True)
    var = jnp.mean((xg - mean) ** 2, axis=(1, 3), keepdims=True)
    y = (xg - mean) * jax.lax.rsqrt(var + eps)
    y = y.reshape(B, H, W, C) * gamma + beta
    if silu:
        y = y * jax.nn.sigmoid(y)
    return y


def _conv3x3_reference(x, w, b):
    y = jax.lax.conv_general_dilated(
        x, w, (1, 1), 'SAME', dimension_numbers=('NHWC', 'HWIO', 'NHWC'),
        precision=_HI)
    return y + b


def _conv1x1_reference(x, w, b):
    return jnp.einsum('bhwc,cd->bhwd', x, w, precision=_HI) + b


def _attn_reference(q, k, v):
    B, H, W, C = q.shape
    qf, kf, vf = (t.reshape(B, H * W, C) for t in (q, k, v))
    s = jnp.einsum('bqc,bkc->bqk', qf, kf, precision=_HI) * (float(C) ** -0.5)
    p = jax.nn.softmax(s, axis=-1)
    return jnp.einsum('bqk,bkc->bqc', p, vf, precision=_HI).reshape(q.shape)


def _resnet_reference(x, p):
    h = _gn_reference(x, p['norm1_g'], p['norm1_b'], silu=True)
    h = _conv3x3_reference(h, p['conv1_w'], p['conv1_b'])
    h = _gn_reference(h, p['norm2_g'], p['norm2_b'], silu=True)
    h = _conv3x3_reference(h, p['conv2_w'], p['conv2_b'])
    if 'nin_w' in p:
        x = _conv1x1_reference(x, p['nin_w'], p['nin_b'])
    return x + h


def _attn_block_reference(x, p):
    h = _gn_reference(x, p['norm_g'], p['norm_b'], silu=False)
    q = _conv1x1_reference(h, p['q_w'], p['q_b'])
    k = _conv1x1_reference(h, p['k_w'], p['k_b'])
    v = _conv1x1_reference(h, p['v_w'], p['v_b'])
    a = _attn_reference(q, k, v)
    return x + _conv1x1_reference(a, p['proj_w'], p['proj_b'])


def _decoder_reference(z_nchw, params):
    h = jnp.transpose(z_nchw, (0, 2, 3, 1))
    h = _conv3x3_reference(h, params['conv_in_w'], params['conv_in_b'])
    h = _resnet_reference(h, params['mid_block1'])
    h = _attn_block_reference(h, params['mid_attn'])
    h = _resnet_reference(h, params['mid_block2'])
    for up in params['up_blocks']:
        for i, blk in enumerate(up['blocks']):
            h = _resnet_reference(h, blk)
            if i < len(up['attn']):
                h = _attn_block_reference(h, up['attn'][i])
        if up['upsample'] is not None:
            h = jnp.repeat(jnp.repeat(h, 2, axis=1), 2, axis=2)
            h = _conv3x3_reference(h, up['upsample']['w'], up['upsample']['b'])
    h = _gn_reference(h, params['norm_out_g'], params['norm_out_b'], silu=True)
    h = _conv3x3_reference(h, params['conv_out_w'], params['conv_out_b'])
    return jnp.transpose(h, (0, 3, 1, 2))


def _assert_close(name, got, ref, tol=3e-2):
    assert got.shape == ref.shape, f"{name}: shape {got.shape} vs {ref.shape}"
    err = float(jnp.max(jnp.abs(got - ref)))
    assert err < tol, f"{name}: max abs err {err}"


# ----------------------------------------------------------------------------
if __name__ == "__main__":
    key = jax.random.PRNGKey(0)
    keys = jax.random.split(key, 16)

    # --- small self-checks that force multi-tile code paths -----------------
    # GroupNorm (HW tiled: 256 -> 4 tiles of 64) + SiLU.
    xg = jax.random.normal(keys[0], (2, 16, 16, 64), jnp.float32)
    gg = 1.0 + 0.1 * jax.random.normal(keys[1], (64,), jnp.float32)
    gb = 0.1 * jax.random.normal(keys[2], (64,), jnp.float32)
    _assert_close("groupnorm",
                  pallas_group_norm(xg, gg, gb, silu=True, tile_hw=64),
                  _gn_reference(xg, gg, gb, silu=True))

    # conv3x3, merged K=3*Cin path, row-tiled (4 tiles), fused residual.
    xc = jax.random.normal(keys[3], (1, 16, 16, 128), jnp.float32)
    wc, bc = _init_conv(keys[4], 3, 3, 128, 64)
    rc = jax.random.normal(keys[5], (1, 16, 16, 64), jnp.float32)
    _assert_close("conv3x3_merged",
                  pallas_conv3x3(xc, wc, bc, residual=rc, row_tile=4),
                  _conv3x3_reference(xc, wc, bc) + rc)

    # conv3x3, per-tap path, fused nearest-2x upsample, row-tiled.
    xu = jax.random.normal(keys[6], (1, 8, 8, 32), jnp.float32)
    wu, bu = _init_conv(keys[7], 3, 3, 32, 32)
    xu_up = jnp.repeat(jnp.repeat(xu, 2, axis=1), 2, axis=2)
    _assert_close("conv3x3_upsample",
                  pallas_conv3x3(xu, wu, bu, upsample2x=True, row_tile=4),
                  _conv3x3_reference(xu_up, wu, bu))

    # conv1x1, N-tiled (4 tiles), fused residual.
    w1, b1 = _init_conv(keys[8], 1, 1, 128, 64)
    w1 = w1.reshape(128, 64)
    _assert_close("conv1x1",
                  pallas_conv1x1(xc, w1, b1, residual=rc, n_tile=64),
                  (jnp.dot(xc.reshape(-1, 128), w1, precision=_HI) + b1
                   + rc.reshape(-1, 64)).reshape(1, 16, 16, 64))

    # flash attention, multiple q and kv tiles (both results are NHWC).
    qa = jax.random.normal(keys[9], (2, 8, 16, 64), jnp.float32)
    ka = jax.random.normal(keys[10], (2, 8, 16, 64), jnp.float32)
    va = jax.random.normal(keys[11], (2, 8, 16, 64), jnp.float32)
    _assert_close("attention",
                  pallas_attention(qa, ka, va, q_tile=64, kv_tile=32),
                  _attn_reference(qa, ka, va))

    # --- full decoder forward ------------------------------------------------
    cfg = dict(out_ch=3, ch=64, z_channels=4, resolution=32, num_res_blocks=1,
               ch_mult=(1, 2), attn_resolutions=[16])
    params = init_decoder(keys[12], **cfg)

    # z spatial = resolution // 2^(num_resolutions-1) = 16 (NCHW, like z_shape).
    z = jax.random.normal(keys[13], (2, cfg['z_channels'], 16, 16), jnp.float32)

    out = decoder_forward(z, params)
    out = jax.block_until_ready(out)
    # Two up-blocks each upsample 2x: 16 -> 32 -> 64; out_ch = 3.
    assert out.shape == (2, 3, 64, 64), out.shape
    assert bool(jnp.all(jnp.isfinite(out)))

    # End-to-end numerical check against the pure-JAX reference decoder.
    ref = _decoder_reference(z, params)
    _assert_close("decoder_forward", out, ref, tol=5e-2)

    print("KERNEL_OK")
</pallas_src>

<mosaic_0001>
module attributes {stable_mosaic.version = 11 : i64} {
  func.func @_gn_stats_kernel(%arg0: i32, %arg1: i32, %arg2: memref<1x64x64xf32, #tpu.memory_space<vmem>>, %arg3: memref<64x128xf32, #tpu.memory_space<vmem>>, %arg4: memref<1x1x128xf32, #tpu.memory_space<vmem>>, %arg5: memref<1x1x128xf32, #tpu.memory_space<vmem>>, %arg6: memref<1x128xf32, #tpu.memory_space<vmem>>, %arg7: memref<1x128xf32, #tpu.memory_space<vmem>>) attributes {dimension_semantics = [#tpu.dimension_semantics<parallel>, #tpu.dimension_semantics<arbitrary>], iteration_bounds = array<i64: 2, 4>, scalar_prefetch = 0 : i64, scratch_operands = 2 : i64, tpu.core_type = #tpu.core_type<tc>, window_params = [{transform_indices = @transform_0, window_bounds = array<i64: 1, 64, 64>}, {pipeline_mode = #tpu.pipeline_mode<synchronous>, transform_indices = @transform_1, window_bounds = array<i64: 64, 128>}, {transform_indices = @transform_2, window_bounds = array<i64: 1, 1, 128>}, {transform_indices = @transform_3, window_bounds = array<i64: 1, 1, 128>}]} {
    %c0_i32 = arith.constant 0 : i32
    %0 = arith.cmpi eq, %arg1, %c0_i32 : i32
    %1 = arith.extui %0 : i1 to i32
    %c0_i32_0 = arith.constant 0 : i32
    %2 = arith.cmpi ne, %1, %c0_i32_0 : i32
    scf.if %2 {
      %cst_17 = arith.constant 0.000000e+00 : f32
      %22 = vector.broadcast %cst_17 : f32 to vector<1x128xf32>
      %c0_18 = arith.constant 0 : index
      %c0_19 = arith.constant 0 : index
      %23 = vector.load %arg6[%c0_18, %c0_19] : memref<1x128xf32, #tpu.memory_space<vmem>>, vector<1x128xf32>
      tpu.vector_store %arg6[%c0_18, %c0_19], %22 {strides = array<i32>} : memref<1x128xf32, #tpu.memory_space<vmem>>, vector<1x128xf32>,
      %cst_20 = arith.constant 0.000000e+00 : f32
      %24 = vector.broadcast %cst_20 : f32 to vector<1x128xf32>
      %c0_21 = arith.constant 0 : index
      %c0_22 = arith.constant 0 : index
      %25 = vector.load %arg7[%c0_21, %c0_22] : memref<1x128xf32, #tpu.memory_space<vmem>>, vector<1x128xf32>
      tpu.vector_store %arg7[%c0_21, %c0_22], %24 {strides = array<i32>} : memref<1x128xf32, #tpu.memory_space<vmem>>, vector<1x128xf32>,
    } else {
    }
    %c0 = arith.constant 0 : index
    %c0_1 = arith.constant 0 : index
    %c0_2 = arith.constant 0 : index
    %3 = vector.load %arg2[%c0, %c0_1, %c0_2] : memref<1x64x64xf32, #tpu.memory_space<vmem>>, vector<1x64x64xf32>
    %4 = vector.shape_cast %3 : vector<1x64x64xf32> to vector<64x64xf32>
    %c0_3 = arith.constant 0 : index
    %c0_4 = arith.constant 0 : index
    %5 = vector.load %arg3[%c0_3, %c0_4] : memref<64x128xf32, #tpu.memory_space<vmem>>, vector<64x128xf32>
    %cst = arith.constant dense<0.000000e+00> : vector<64xf32>
    %6 = vector.multi_reduction <add>, %4, %cst [0] : vector<64x64xf32> to vector<64xf32>
    %7 = vector.shape_cast %6 : vector<64xf32> to vector<1x64xf32>
    %8 = arith.mulf %4, %4 : vector<64x64xf32>
    %cst_5 = arith.constant dense<0.000000e+00> : vector<64xf32>
    %9 = vector.multi_reduction <add>, %8, %cst_5 [0] : vector<64x64xf32> to vector<64xf32>
    %10 = vector.shape_cast %9 : vector<64xf32> to vector<1x64xf32>
    %c0_6 = arith.constant 0 : index
    %c0_7 = arith.constant 0 : index
    %11 = vector.load %arg6[%c0_6, %c0_7] : memref<1x128xf32, #tpu.memory_space<vmem>>, vector<1x128xf32>
    %cst_8 = arith.constant dense<0.000000e+00> : vector<1x128xf32>
    %12 = tpu.matmul %7, %5, %cst_8 {dimension_numbers = #tpu.dot_dimension_numbers<[1], [0], [0], [1], [0, 0, 1, 1], [], []>} : vector<1x64xf32>, vector<64x128xf32>, vector<1x128xf32> -> vector<1x128xf32>
    %13 = arith.addf %11, %12 : vector<1x128xf32>
    %c0_9 = arith.constant 0 : index
    %c0_10 = arith.constant 0 : index
    %14 = vector.load %arg6[%c0_9, %c0_10] : memref<1x128xf32, #tpu.memory_space<vmem>>, vector<1x128xf32>
    tpu.vector_store %arg6[%c0_9, %c0_10], %13 {strides = array<i32>} : memref<1x128xf32, #tpu.memory_space<vmem>>, vector<1x128xf32>,
    %c0_11 = arith.constant 0 : index
    %c0_12 = arith.constant 0 : index
    %15 = vector.load %arg7[%c0_11, %c0_12] : memref<1x128xf32, #tpu.memory_space<vmem>>, vector<1x128xf32>
    %cst_13 = arith.constant dense<0.000000e+00> : vector<1x128xf32>
    %16 = tpu.matmul %10, %5, %cst_13 {dimension_numbers = #tpu.dot_dimension_numbers<[1], [0], [0], [1], [0, 0, 1, 1], [], []>} : vector<1x64xf32>, vector<64x128xf32>, vector<1x128xf32> -> vector<1x128xf32>
    %17 = arith.addf %15, %16 : vector<1x128xf32>
    %c0_14 = arith.constant 0 : index
    %c0_15 = arith.constant 0 : index
    %18 = vector.load %arg7[%c0_14, %c0_15] : memref<1x128xf32, #tpu.memory_space<vmem>>, vector<1x128xf32>
    tpu.vector_store %arg7[%c0_14, %c0_15], %17 {strides = array<i32>} : memref<1x128xf32, #tpu.memory_space<vmem>>, vector<1x128xf32>,
    %c3_i32 = arith.constant 3 : i32
    %19 = arith.cmpi eq, %arg1, %c3_i32 : i32
    %20 = arith.extui %19 : i1 to i32
    %c0_i32_16 = arith.constant 0 : i32
    %21 = arith.cmpi ne, %20, %c0_i32_16 : i32
    scf.if %21 {
      %c0_17 = arith.constant 0 : index
      %c0_18 = arith.constant 0 : index
      %22 = vector.load %arg6[%c0_17, %c0_18] : memref<1x128xf32, #tpu.memory_space<vmem>>, vector<1x128xf32>
      %c0_19 = arith.constant 0 : index
      %c0_20 = arith.constant 0 : index
      %c0_21 = arith.constant 0 : index
      %23 = vector.load %arg4[%c0_19, %c0_20, %c0_21] : memref<1x1x128xf32, #tpu.memory_space<vmem>>, vector<1x1x128xf32>
      %24 = vector.shape_cast %23 : vector<1x1x128xf32> to vector<1x128xf32>
      %25 = vector.shape_cast %22 : vector<1x128xf32> to vector<1x1x128xf32>
      tpu.vector_store %arg4[%c0_19, %c0_20, %c0_21], %25 {strides = array<i32>} : memref<1x1x128xf32, #tpu.memory_space<vmem>>, vector<1x1x128xf32>,
      %c0_22 = arith.constant 0 : index
      %c0_23 = arith.constant 0 : index
      %26 = vector.load %arg7[%c0_22, %c0_23] : memref<1x128xf32, #tpu.memory_space<vmem>>, vector<1x128xf32>
      %c0_24 = arith.constant 0 : index
      %c0_25 = arith.constant 0 : index
      %c0_26 = arith.constant 0 : index
      %27 = vector.load %arg5[%c0_24, %c0_25, %c0_26] : memref<1x1x128xf32, #tpu.memory_space<vmem>>, vector<1x1x128xf32>
      %28 = vector.shape_cast %27 : vector<1x1x128xf32> to vector<1x128xf32>
      %29 = vector.shape_cast %26 : vector<1x128xf32> to vector<1x1x128xf32>
      tpu.vector_store %arg5[%c0_24, %c0_25, %c0_26], %29 {strides = array<i32>} : memref<1x1x128xf32, #tpu.memory_space<vmem>>, vector<1x1x128xf32>,
    } else {
    }
    return
  }
  func.func @transform_0(%arg0: i32, %arg1: i32) -> (i32, i32, i32) {
    %c0_i32 = arith.constant 0 : i32
    %c0_i32_0 = arith.constant 0 : i32
    return %arg0, %arg1, %c0_i32 : i32, i32, i32
  }
  func.func @transform_1(%arg0: i32, %arg1: i32) -> (i32, i32) {
    %c0_i32 = arith.constant 0 : i32
    %c0_i32_0 = arith.constant 0 : i32
    %c0_i32_1 = arith.constant 0 : i32
    return %c0_i32, %c0_i32_0 : i32, i32
  }
  func.func @transform_2(%arg0: i32, %arg1: i32) -> (i32, i32, i32) {
    %c0_i32 = arith.constant 0 : i32
    %c0_i32_0 = arith.constant 0 : i32
    %c0_i32_1 = arith.constant 0 : i32
    return %arg0, %c0_i32, %c0_i32_0 : i32, i32, i32
  }
  func.func @transform_3(%arg0: i32, %arg1: i32) -> (i32, i32, i32) {
    %c0_i32 = arith.constant 0 : i32
    %c0_i32_0 = arith.constant 0 : i32
    %c0_i32_1 = arith.constant 0 : i32
    return %arg0, %c0_i32, %c0_i32_0 : i32, i32, i32
  }
}

</mosaic_0001>

<bundles_post_ra>
// kernel: tpu_custom_call.1
= control target key start
LH: loop header
LB: loop body
LE: loop exit
PB: predicated region body
PF: predicated region fallthrough
CT: control target
= control target key end

     0   :  { %9 = vsyncpa [#allocation5], 0  ;;  %s909_s0 = inlined_call_operand.vmem [shape: f32[2,256,64], index: 0, kind: input, shape index: {}]   ;;  %s910_s1 = inlined_call_operand.vmem [shape: f32[64,128], index: 1, kind: input, shape index: {}]   ;;  %s911_s2 = inlined_call_operand.hbm [shape: f32[2,1,128], index: 2, kind: output, shape index: {0}]   ;;  %s912_s3 = inlined_call_operand.hbm [shape: f32[2,1,128], index: 3, kind: output, shape index: {1}]  }
   0x1   :  { %11 = vsyncpa [#allocation5 + $0x1], 0 }
   0x2   :  { %12 = vsyncpa [#allocation7], 0 }
   0x3   :  { %14 = vsyncpa [#allocation7 + $0x1], 0  ;;  %s709_s12 = smov 0   ;;  %s711_s13 = smov 0  }
   0x4   :  { %s713_s14 = smov 0   ;;  %s715_s15 = smov 0  }
   0x5   :  { %s717_s16 = smov 0   ;;  %s719_s17 = smov 0  }
   0x6   :  { %s721_s18 = smov 0   ;;  %s723_s19 = smov 0  }
   0x7 LB: > { %s469_s20 = sadd.s32 4294967295, %s686_s19   ;;  %s470_s21 = sadd.s32 4294967294, %s686_s19   ;;  %s686_s19 = sphi %s723_s19, %s20_s19   ;;  %s682_s18 = sphi %s721_s18, %s921_s18   ;;  %s678_s17 = sphi %s719_s17, %s920_s17   ;;  %s674_s16 = sphi %s717_s16, %s919_s16   ;;  %s670_s15 = sphi %s715_s15, %s918_s15   ;;  %s666_s14 = sphi %s713_s14, %s917_s14   ;;  %s662_s13 = sphi %s711_s13, %s916_s13   ;;  %s658_s12 = sphi %s709_s12, %s915_s12  }
   0x8   : > { %s29_s22 = sadd.s32 1, %s678_s17  ;;  %s32_s23 = sadd.s32 1, %s682_s18 }
   0x9   : > { %p30_p0 = scmp.ge.s32.totalorder %s29_s22, 4  ;;  %p98_p1 = scmp.ne.s32.totalorder %s666_s14, %s662_s13 }
   0xa   : > { %p99_p2 = scmp.eq.s32.totalorder %s469_s20, 7  ;;  %p104_p4 = scmp.ne.s32.totalorder %s662_s13, %s658_s12 }
   0xb   : > { %s923_s22 = smov (%p30_p0, %s29_s22), 0  ;;  %s925_s23 = smov (!%p30_p0, %s32_s23), %s682_s18 }
   0xc   : > { %p758_p3 = por %p99_p2, %p98_p1  ;;  %p34_p5 = scmp.ge.s32.totalorder %s925_s23, 2 }
   0xd   : > { %p105_p6 = scmp.eq.s32.totalorder %s470_s21, 7  ;;  %p473_p7 = scmp.ge.s32.totalorder %s686_s19, 1 }
   0xe   : > { %p165_p8 = scmp.lt.s32.totalorder %s686_s19, 9  ;;  %s927_s23 = smov (%p34_p5, %s925_s23), 0 }
   0xf   : > { %p768_p9 = por %p105_p6, %p104_p4  ;;  %s85_s26 = ssub.s32 %s682_s18, %s927_s23 }
  0x10   : > { %p166_p10 = pnand %p473_p7, %p165_p8  ;;  %s88_s27 = sadd.s32 1, %s666_s14 }
  0x11   : > { %p86_p11 = scmp.eq.s32.totalorder %s85_s26, 0  ;;  %s779_s29 = sand.u32 (!%p166_p10), 1, %s662_s13  }
  0x12   : > { %169 = sbr.rel (%p166_p10) target bundleno = 229 (0xe5), region = 28  ;;  %s474_s30 = sshll.u32 (!%p166_p10), %s670_s15, 3 }
  0x13   : > { %s776_s28 = scalar_select %p86_p11, %s666_s14, %s88_s27  }
  0x14   : > { %p197_p12 = scmp.lt.s32.totalorder (!%p166_p10), %s674_s16, 1  ;;  %p199_p13 = scmp.lt.s32.totalorder (!%p166_p10), %s474_s30, 31 }
  0x15   : > { %s189_s11 = scalar_lea.vmem (!%p166_p10), [#allocation4], %s779_s29  ;;  %s195_s20 = scalar_lea.vmem (!%p166_p10), [#allocation6], %s779_s29 }
  0x16   : > { %p477_p0 = scmp.ne.s32.totalorder (!%p166_p10), %s670_s15, 0 }
  0x17   : > { %s198_s4 = scalar_select %p197_p12, %s674_s16, 1 }
  0x18   : > { %s929_s30 = smov (!%p199_p13, %s474_s30), 31  ;;  %209 = sbr.rel (%p477_p0) target bundleno = 32 (0x20), region = 32 }
  0x19   : > { %s475_s5 = sshll.u32 %s198_s4, 5 }
  0x1a   : > { %s202_s6 = sadd.s32 %s475_s5, %s929_s30 }
  0x1b   : > { %s476_s7 = sshll.u32 %s202_s6, 3 }
  0x1c   : > { %s787_s10 = scalar_lea.vmem %s909_s0, %s476_s7 }
  0x1d   : > { %v688_v0 = vmov 0.0  }
  0x1e   : > { %210 = vst [vmem:[#allocation2] sm:$0x1] %v688_v0 }
  0x1f   : > { %211 = vst [vmem:[#allocation3] sm:$0x1] %v688_v0 }
  0x20 PF: > { %v227_v1 = vld [vmem:[%s910_s1 + $0x38] sm:$0xff]  ;;  %v226_v2 = vld [vmem:[%s910_s1 + $0x30] sm:$0xff]  ;;  %vm228_vm0 = vcmask 523264   ;;  %v225_v3 = vld [vmem:[%s910_s1 + $0x28] sm:$0xff]  ;;  %p480_p1 = scmp.ne.s32.totalorder %s670_s15, 3 }
  0x21   : > { %291 = vmatpush.msra.mxu0 %v227_v1  ;;  %317 = vmatpush.msra.mxu1 %v227_v1  ;;  %v212_v4 = vld [vmem:[%s787_s10] sm:$0xff]  ;;  %v213_v5 = vld [vmem:[%s787_s10 + $0x8] sm:$0xff]  ;;  %v214_v6 = vld [vmem:[%s787_s10 + $0x10] sm:$0xff] }
  0x22   : > { %v215_v7 = vld [vmem:[%s787_s10 + $0x18] sm:$0xff]  ;;  %v229_v8 = vsel %vm228_vm0, %v212_v4, 0.0  ;;  %v250_v9 = vmul.f32 %v212_v4, %v212_v4  ;;  %v224_v10 = vld [vmem:[%s910_s1 + $0x20] sm:$0xff]  ;;  %v230_v11 = vsel %vm228_vm0, %v213_v5, 0.0  ;;  %v232_v12 = vsel %vm228_vm0, %v214_v6, 0.0  ;;  %v217_v20 = vld [vmem:[%s787_s10 + $0x28] sm:$0xff] }
  0x23   : > { %292 = vmatpush.msra.mxu0 %v226_v2  ;;  %318 = vmatpush.msra.mxu1 %v226_v2  ;;  %v251_v13 = vmul.f32 %v213_v5, %v213_v5  ;;  %v216_v14 = vld [vmem:[%s787_s10 + $0x20] sm:$0xff]  ;;  %v231_v15 = vadd.f32 %v230_v11, %v229_v8  ;;  %v223_v16 = vld [vmem:[%s910_s1 + $0x18] sm:$0xff]  ;;  %v234_v17 = vsel %vm228_vm0, %v215_v7, 0.0  ;;  %v252_v18 = vmul.f32 %v214_v6, %v214_v6  ;;  %v222_v23 = vld [vmem:[%s910_s1 + $0x10] sm:$0xff] }
  0x24   : > { %v253_v19 = vmul.f32 %v215_v7, %v215_v7  ;;  %v258_v22 = vsel %vm228_vm0, %v250_v9, 0.0  ;;  %v236_v24 = vsel %vm228_vm0, %v216_v14, 0.0  ;;  %v254_v25 = vmul.f32 %v216_v14, %v216_v14  ;;  %v218_v28 = vld [vmem:[%s787_s10 + $0x30] sm:$0xff]  ;;  %v221_v31 = vld [vmem:[%s910_s1 + $0x8] sm:$0xff]  ;;  %v219_v35 = vld [vmem:[%s787_s10 + $0x38] sm:$0xff] }
  0x25   : > { %293 = vmatpush.msra.mxu0 %v225_v3  ;;  %319 = vmatpush.msra.mxu1 %v225_v3  ;;  %v233_v21 = vadd.f32 %v232_v12, %v231_v15  ;;  %v259_v26 = vsel %vm228_vm0, %v251_v13, 0.0  ;;  %v261_v27 = vsel %vm228_vm0, %v252_v18, 0.0  ;;  %v238_v32 = vsel %vm228_vm0, %v217_v20, 0.0  ;;  %v220_v38 = vld [vmem:[%s910_s1] sm:$0xff] }
  0x26   : > { %v260_v30 = vadd.f32 %v259_v26, %v258_v22  ;;  %v255_v33 = vmul.f32 %v217_v20, %v217_v20  ;;  %v263_v34 = vsel %vm228_vm0, %v253_v19, 0.0  ;;  %v240_v39 = vsel %vm228_vm0, %v218_v28, 0.0  ;;  %v279_v3 = vld [vmem:[#allocation2] sm:$0x1]  ;;  %v305_v6 = vld [vmem:[#allocation3] sm:$0x1] }
  0x27   : > { %294 = vmatpush.msra.mxu0 %v224_v10  ;;  %320 = vmatpush.msra.mxu1 %v224_v10  ;;  %v235_v29 = vadd.f32 %v234_v17, %v233_v21  ;;  %v256_v40 = vmul.f32 %v218_v28, %v218_v28  ;;  %v265_v41 = vsel %vm228_vm0, %v254_v25, 0.0  ;;  %v242_v44 = vsel %vm228_vm0, %v219_v35, 0.0 }
  0x28   : > { %v262_v37 = vadd.f32 %v261_v27, %v260_v30  ;;  %v257_v45 = vmul.f32 %v219_v35, %v219_v35  ;;  %v267_v46 = vsel %vm228_vm0, %v255_v33, 0.0 }
  0x29   : > { %295 = vmatpush.msra.mxu0 %v223_v16  ;;  %321 = vmatpush.msra.mxu1 %v223_v16  ;;  %v237_v36 = vadd.f32 %v236_v24, %v235_v29  ;;  %v269_v49 = vsel %vm228_vm0, %v256_v40, 0.0 }
  0x2a   : > { %v264_v43 = vadd.f32 %v263_v34, %v262_v37  ;;  %v271_v52 = vsel %vm228_vm0, %v257_v45, 0.0 }
  0x2b   : > { %296 = vmatpush.msra.mxu0 %v222_v23  ;;  %322 = vmatpush.msra.mxu1 %v222_v23  ;;  %v239_v42 = vadd.f32 %v238_v32, %v237_v36 }
  0x2c   : > { %v266_v48 = vadd.f32 %v265_v41, %v264_v43 }
  0x2d   : > { %297 = vmatpush.msra.mxu0 %v221_v31  ;;  %323 = vmatpush.msra.mxu1 %v221_v31  ;;  %v241_v47 = vadd.f32 %v240_v39, %v239_v42 }
  0x2e   : > { %v268_v51 = vadd.f32 %v267_v46, %v266_v48 }
  0x2f   : > { %298 = vmatpush.msra.mxu0 %v220_v38  ;;  %324 = vmatpush.msra.mxu1 %v220_v38  ;;  %v243_v50 = vadd.f32 %v242_v44, %v241_v47 }
  0x30   : > { %v270_v54 = vadd.f32 %v269_v49, %v268_v51 }
  0x31   : > { %v244_v53 = vrot.slane %v243_v50, 4 }
  0x32   : > { %v272_v56 = vadd.f32 %v271_v52, %v270_v54 }
  0x33   : > { %v245_v55 = vadd.f32 %v244_v53, %v243_v50 }
  0x34   : > { %v273_v58 = vrot.slane %v272_v56, 4 }
  0x35   : > { %v246_v57 = vrot.slane %v245_v55, 2 }
  0x36   : > { %v274_v60 = vadd.f32 %v273_v58, %v272_v56 }
  0x37   : > { %v247_v59 = vadd.f32 %v246_v57, %v245_v55 }
  0x38   : > { %v275_v62 = vrot.slane %v274_v60, 2 }
  0x39   : > { %v248_v61 = vrot.slane %v247_v59, 1 }
  0x3a   : > { %v276_v0 = vadd.f32 %v275_v62, %v274_v60 }
  0x3b   : > { %v249_v63 = vadd.f32 %v248_v61, %v247_v59 }
  0x3c   : > { %v277_v1 = vrot.slane %v276_v0, 1 }
  0x3d   : > { %478 = vmatmul.msk.f32.vlgmr.msra.gmra.mxu0 %vm228_vm0, %v249_v63 }
  0x3e   : > { %v278_v2 = vadd.f32 %v277_v1, %v276_v0 }
  0x40   : > { %479 = vmatmul.msk.f32.vlgmr.msra.gmra.mxu1 %vm228_vm0, %v278_v2 }
  0xba   : > { %v300_v4 = vpop.f32.mrf.mxu0 }
  0xbb   : > { %v303_v5 = vadd.f32 %v300_v4, %v279_v3 }
  0xbc   : > { %334 = sbr.rel (%p480_p1) target bundleno = 201 (0xc9), region = 36 }
  0xbd   : > { %304 = vst [vmem:[#allocation2] sm:$0x1] %v303_v5  ;;  %v326_v7 = vpop.f32.mrf.mxu1 }
  0xbe   : > { %v329_v8 = vadd.f32 %v326_v7, %v305_v6 }
  0xc0   : > { %330 = vst [vmem:[#allocation3] sm:$0x1] %v329_v8 }
  0xc4   : > { %v335_v9 = vld [vmem:[#allocation2] sm:$0x1] }
  0xc5   : > { %336 = vst [vmem:[%s189_s11] sm:$0x1] %v335_v9 }
  0xc7   : > { %v337_v10 = vld [vmem:[#allocation3] sm:$0x1] }
  0xc8   : > { %338 = vst [vmem:[%s195_s20] sm:$0x1] %v337_v10 }
  0xc9 PF: > { %s352_s7 = scalar_lea.hbm %s911_s2, %s674_s16  ;;  %s354_s15 = sshll.u32 %s189_s11, 4  ;;  %s355_s15 = int_to_ptr.vmem [resolvable:$true] %s354_s15 }
  0xca   : > { %s356_s8 = sshll.u32 %s352_s7, 4  ;;  %s340_s9 = scalar_lea.sflag [#allocation5], %s779_s29  ;;  %s357_s8 = int_to_ptr.hbm [resolvable:$true] %s356_s8 }
  0xcb   : > { %s574_s21 = sshra.s32 %s357_s8, 4  ;;  %s580_s4 = scalar_lea.hbm %s911_s2, 2  ;;  %s575_s21 = int_to_ptr.hbm [resolvable:$true] %s574_s21 }
  0xcc   : > { %s576_s26 = scalar_lea.hbm %s575_s21, 1  ;;  %p581_p6 = scmp.lt.s32.totalorder %s575_s21, %s911_s2 }
  0xcd   : > { %p577_p2 = scmp.ne.s32.totalorder %s575_s21, %s576_s26  ;;  %p582_p7 = scmp.lt.s32.totalorder %s580_s4, %s576_s26 }
  0xcf   : > { %p578_p4 = pnand %p577_p2, %p758_p3  ;;  %p583_p8 = por %p582_p7, %p581_p6 }
  0xd1   : > { %p579_p5 = pneg %p578_p4 }
  0xd3   : > { %p584_p10 = pnand %p583_p8, %p579_p5 }
  0xd5   : > { %587 = shalt.err (!%p584_p10)
}
  0xd6   : > { %483 = dma.vmem_to_hbm [thread:$0]  (%p758_p3), %s355_s15, 16, %s357_s8, %s340_s9  }
  0xd7   : > { %s365_s7 = scalar_lea.hbm %s912_s3, %s674_s16  ;;  %s367_s27 = sshll.u32 %s195_s20, 4  ;;  %s368_s27 = int_to_ptr.vmem [resolvable:$true] %s367_s27 }
  0xd8   : > { %s369_s30 = sshll.u32 %s365_s7, 4  ;;  %s344_s21 = scalar_lea.sflag [#allocation7], %s779_s29  ;;  %s370_s30 = int_to_ptr.hbm [resolvable:$true] %s369_s30 }
  0xd9   : > { %s602_s26 = sshra.s32 %s370_s30, 4  ;;  %s608_s15 = scalar_lea.hbm %s912_s3, 2  ;;  %s603_s26 = int_to_ptr.hbm [resolvable:$true] %s602_s26 }
  0xda   : > { %s604_s4 = scalar_lea.hbm %s603_s26, 1  ;;  %p609_p0 = scmp.lt.s32.totalorder %s603_s26, %s912_s3 }
  0xdb   : > { %p605_p11 = scmp.ne.s32.totalorder %s603_s26, %s604_s4  ;;  %p610_p1 = scmp.lt.s32.totalorder %s608_s15, %s604_s4 }
  0xdd   : > { %p606_p12 = pnand %p605_p11, %p758_p3  ;;  %p611_p2 = por %p610_p1, %p609_p0 }
  0xdf   : > { %p607_p13 = pneg %p606_p12 }
  0xe1   : > { %p612_p4 = pnand %p611_p2, %p607_p13 }
  0xe3   : > { %615 = shalt.err (!%p612_p4)
}
  0xe4   : > { %484 = dma.vmem_to_hbm [thread:$0]  (%p758_p3), %s368_s27, 16, %s370_s30, %s344_s21  }
  0xe5 PF: > { %p494_p5 = scmp.ge.s32.totalorder %s686_s19, 2  ;;  %s381_s16 = sand.u32 1, %s658_s12  }
  0xe6   : > { %s382_s29 = scalar_lea.sflag [#allocation5], %s381_s16 }
  0xe7   : > { %p488_p6 = pnand %p494_p5, %p768_p9 }
  0xe9   : > { %p489_p7 = pneg %p488_p6 }
  0xeb   : > { %649 = dma.done.wait (%p489_p7), %s382_s29, 16  }
  0xec   : > { %651 = vsyncadd (%p489_p7), %s382_s29, 4294967280  ;;  %s391_s20 = scalar_lea.sflag [#allocation7], %s381_s16 }
  0xed   : > { %653 = dma.done.wait (%p489_p7), %s391_s20, 16  }
  0xee   : > { %655 = vsyncadd (%p489_p7), %s391_s20, 4294967280  ;;  %s20_s19 = sadd.s32 1, %s686_s19   ;;  %s915_s12 = smov %s662_s13 }
  0xef   : > { %p17_p8 = scmp.ge.s32.totalorder %s20_s19, 10   ;;  %s916_s13 = smov %s666_s14 }
  0xf0   : > { %s917_s14 = smov %s776_s28  ;;  %s918_s15 = smov %s678_s17 }
  0xf1   : > { %s919_s16 = smov %s682_s18  ;;  %s920_s17 = smov %s923_s22 }
  0xf2   : > { %s921_s18 = smov %s927_s23  ;;  %19 = sbr.rel (!%p17_p8) target bundleno = 7 (0x7), region = 88 }
  0xf7   :  { %396 = vsyncpa [#allocation5], 1 }
  0xf8   :  { %398 = vsyncpa [#allocation5 + $0x1], 1 }
  0xf9   :  { %399 = vsyncpa [#allocation7], 1 }
  0xfa   :  { %401 = vsyncpa [#allocation7 + $0x1], 1 }

</bundles_post_ra>
